<compile_context>
chip_gen: v7x
topology: tpu7x:2x2x1
jax: 0.10.0
libtpu: 0.0.40
codegen_flags: <defaults>
</compile_context>

<pallas_src>
import functools

import jax
import jax.numpy as jnp
from jax.experimental import pallas as pl
from jax.experimental.pallas import tpu as pltpu

_NEG_SLOPE = 0.1   # LeakyReLU(0.1), matching the reference module
_BN_EPS = 1e-5


def _leaky(y):
    return jnp.where(y >= 0.0, y, _NEG_SLOPE * y)


# ----------------------------- fused Pallas kernel ---------------------------

def _residual_operator_kernel(wo_width, a0_ref, w0_ref, b0_ref,
                              w1_ref, b1_ref, w2_ref, b2_ref, mask_ref, o_ref):
    """Entire ResidualOperator forward; activations never leave VMEM.

    a0_ref : (9*Cin, M)        tap matrix of the input for the stride-2 3x3 conv
    w0_ref : (C2, 9*Cin)       folded (BN-scaled) weight of the stride-2 conv
    b0_ref : (C2, 1)           folded bias
    w1_ref : (R, Cmid, C2)     folded 1x1 conv weights (stacked over residual blocks)
    b1_ref : (R, Cmid, 1)
    w2_ref : (R*9, C2, Cmid)   folded 3x3 conv weights, per-tap blocks, (kh,kw)-major
    b2_ref : (R, C2, 1)
    mask_ref: (9, Cmid, M)     zero-padding validity mask per tap
    o_ref  : (C2, M)           output activation
    """
    c2, m = o_ref.shape
    repeat = w1_ref.shape[0]

    # --- stage 0: downsampling 3x3 stride-2 conv + folded BN + LeakyReLU --------
    y = jnp.dot(w0_ref[...], a0_ref[...], preferred_element_type=jnp.float32)
    x = _leaky(y + b0_ref[...])                       # (C2, M) f32, VMEM-resident

    # --- residual blocks (statically unrolled) ----------------------------------
    for i in range(repeat):
        # 1x1 conv + BN + LeakyReLU (consumed in-kernel; never hits HBM)
        h = jnp.dot(w1_ref[i], x, preferred_element_type=jnp.float32)
        h = _leaky(h + b1_ref[i])                     # (Cmid, M) f32

        # 3x3 stride-1 conv as 9 shifted-tap matmuls accumulated in f32 (no im2col)
        acc = jnp.zeros((c2, m), jnp.float32)
        t = 0
        for dh in (-1, 0, 1):
            for dw in (-1, 0, 1):
                off = dh * wo_width + dw              # flat-index shift of this tap
                # want tap[m'] = h[:, m' + off]  ->  jnp.roll-style shift of -off
                tap = h if off == 0 else pltpu.roll(h, (-off) % m, axis=1)
                tap = tap * mask_ref[t]               # zero out padded / wrapped taps
                acc = acc + jnp.dot(w2_ref[i * 9 + t], tap,
                                    preferred_element_type=jnp.float32)
                t += 1
        x = x + _leaky(acc + b2_ref[i])               # fused residual add

    o_ref[...] = x


# ----------------------------- JAX glue --------------------------------------

def _fold_cnnblock(p):
    """Fold conv bias + eval-mode BN into (scaled conv weight, bias)."""
    scale = p["gamma"] * jax.lax.rsqrt(p["run_var"] + _BN_EPS)
    bias = (p["conv_b"] - p["run_mean"]) * scale + p["beta"]
    w = p["conv_w"] * scale[:, None, None, None]
    return w, bias


def _conv0_taps(x_cnhw, k, stride):
    """(C,N,H,W) -> tap matrix (k*k*C, N*Ho*Wo); taps ordered (kh,kw)-major, channel-minor."""
    pad = (k - 1) // 2
    c, n, h, w = x_cnhw.shape
    xp = jnp.pad(x_cnhw, ((0, 0), (0, 0), (pad, pad), (pad, pad)))
    ho = (h + 2 * pad - k) // stride + 1
    wo = (w + 2 * pad - k) // stride + 1
    taps = []
    for dh in range(k):
        for dw in range(k):
            taps.append(xp[:, :, dh:dh + stride * ho:stride, dw:dw + stride * wo:stride])
    a = jnp.stack(taps, axis=0).reshape(k * k * c, n * ho * wo)
    return a, (n, ho, wo)


def _tap_masks(n, ho, wo, cmid):
    """(9, Cmid, M) validity masks for the in-kernel stride-1 3x3 shifted taps."""
    m_idx = jnp.arange(n * ho * wo)
    h_idx = (m_idx // wo) % ho
    w_idx = m_idx % wo
    masks = []
    for dh in (-1, 0, 1):
        for dw in (-1, 0, 1):
            ok = ((h_idx + dh >= 0) & (h_idx + dh < ho) &
                  (w_idx + dw >= 0) & (w_idx + dw < wo))
            masks.append(ok)
    masks = jnp.stack(masks, axis=0)                              # (9, M) bool
    return jnp.broadcast_to(masks[:, None, :],
                            (9, cmid, n * ho * wo)).astype(jnp.float32)


def residual_operator_forward(x_nchw, params, in_channels, repeat):
    """Pallas implementation of ResidualOperator.forward (NCHW in/out, f32)."""
    del in_channels  # channel counts come from the parameter shapes
    assert repeat == len(params["layers"])

    x_cnhw = jnp.transpose(x_nchw, (1, 0, 2, 3)).astype(jnp.float32)  # (C, N, H, W)

    # ---- fold + pack the downsampling 3x3 stride-2 conv ----
    c2, cin, k0, _ = params["conv"]["conv_w"].shape
    w0, b0 = _fold_cnnblock(params["conv"])
    w0_mat = jnp.transpose(w0, (0, 2, 3, 1)).reshape(c2, k0 * k0 * cin)   # (C2, 9*Cin)
    b0_col = b0.reshape(c2, 1)
    a0, (n, ho, wo) = _conv0_taps(x_cnhw, k0, stride=2)                   # (9*Cin, M)
    m = n * ho * wo

    # ---- fold + stack the residual-block weights (same shapes every block) ----
    cmid = params["layers"][0]["conv1"]["conv_w"].shape[0]
    w1_l, b1_l, w2_l, b2_l = [], [], [], []
    for blk in params["layers"]:
        w1, b1 = _fold_cnnblock(blk["conv1"])
        w1_l.append(w1.reshape(cmid, c2))
        b1_l.append(b1.reshape(cmid, 1))
        w2, b2 = _fold_cnnblock(blk["conv2"])
        # per-tap (kh,kw)-major weight blocks: (9, C2, Cmid)
        w2_l.append(jnp.transpose(w2, (2, 3, 0, 1)).reshape(9, c2, cmid))
        b2_l.append(b2.reshape(c2, 1))
    w1_all = jnp.stack(w1_l, axis=0)          # (R, Cmid, C2)
    b1_all = jnp.stack(b1_l, axis=0)          # (R, Cmid, 1)
    w2_all = jnp.concatenate(w2_l, axis=0)    # (R*9, C2, Cmid)
    b2_all = jnp.stack(b2_l, axis=0)          # (R, C2, 1)
    masks = _tap_masks(n, ho, wo, cmid)       # (9, Cmid, M)

    # ---- one grid-less pallas_call: every array fits in VMEM as a whole block ----
    out = pl.pallas_call(
        functools.partial(_residual_operator_kernel, wo),
        out_shape=jax.ShapeDtypeStruct((c2, m), jnp.float32),
    )(a0, w0_mat, b0_col, w1_all, b1_all, w2_all, b2_all, masks)

    return jnp.transpose(out.reshape(c2, n, ho, wo), (1, 0, 2, 3))  # -> NCHW


# ----------------------------- pure-JAX reference (eval-mode BN) -------------

def _ref_cnnblock(x, p, stride):
    k = p["conv_w"].shape[2]
    pad = (k - 1) // 2
    y = jax.lax.conv_general_dilated(
        x, p["conv_w"], window_strides=(stride, stride),
        padding=((pad, pad), (pad, pad)),
        dimension_numbers=("NCHW", "OIHW", "NCHW"))
    y = y + p["conv_b"][None, :, None, None]
    scale = p["gamma"] / jnp.sqrt(p["run_var"] + _BN_EPS)
    y = (y - p["run_mean"][None, :, None, None]) * scale[None, :, None, None] \
        + p["beta"][None, :, None, None]
    return jnp.where(y >= 0.0, y, _NEG_SLOPE * y)


def residual_operator_reference(x, params):
    x = _ref_cnnblock(x, params["conv"], 2)
    for blk in params["layers"]:
        h = _ref_cnnblock(x, blk["conv1"], 1)
        x = x + _ref_cnnblock(h, blk["conv2"], 1)
    return x


# ----------------------------- parameter init --------------------------------

def _init_cnnblock(key, cin, cout, k):
    ks = jax.random.split(key, 6)
    return {
        "conv_w": 0.1 * jax.random.normal(ks[0], (cout, cin, k, k), jnp.float32),
        "conv_b": 0.1 * jax.random.normal(ks[1], (cout,), jnp.float32),
        "gamma": 1.0 + 0.1 * jax.random.normal(ks[2], (cout,), jnp.float32),
        "beta": 0.1 * jax.random.normal(ks[3], (cout,), jnp.float32),
        "run_mean": 0.1 * jax.random.normal(ks[4], (cout,), jnp.float32),
        "run_var": jax.random.uniform(ks[5], (cout,), jnp.float32, 0.5, 1.5),
    }


def init_residual_operator_params(key, in_channels, repeat):
    c2 = in_channels * 2
    keys = jax.random.split(key, 1 + 2 * repeat)
    params = {"conv": _init_cnnblock(keys[0], in_channels, c2, 3), "layers": []}
    for i in range(repeat):
        params["layers"].append({
            "conv1": _init_cnnblock(keys[1 + 2 * i], c2, c2 // 2, 1),
            "conv2": _init_cnnblock(keys[2 + 2 * i], c2 // 2, c2, 3),
        })
    return params


# ----------------------------- main -------------------------------------------

if __name__ == "__main__":
    key = jax.random.PRNGKey(0)
    k_x, k_p = jax.random.split(key)

    in_channels, repeat = 4, 2
    x = jax.random.normal(k_x, (2, in_channels, 16, 16), jnp.float32)  # NCHW
    params = init_residual_operator_params(k_p, in_channels, repeat)

    fwd = jax.jit(functools.partial(residual_operator_forward,
                                    in_channels=in_channels, repeat=repeat))
    out = fwd(x, params)
    jax.block_until_ready(out)

    assert out.shape == (2, in_channels * 2, 8, 8), out.shape

    # Self-check against a pure-JAX eval-mode reference (loose tol covers MXU
    # pass precision; structural errors would be orders of magnitude larger).
    ref = residual_operator_reference(x, params)
    assert bool(jnp.allclose(out, ref, rtol=2e-2, atol=2e-2)), \
        float(jnp.max(jnp.abs(out - ref)))

    print("KERNEL_OK")
</pallas_src>

<mosaic_0001>
module attributes {stable_mosaic.version = 11 : i64} {
  func.func @_residual_operator_kernel(%arg0: memref<36x128xf32, #tpu.memory_space<vmem>>, %arg1: memref<8x36xf32, #tpu.memory_space<vmem>>, %arg2: memref<8x1xf32, #tpu.memory_space<vmem>>, %arg3: memref<2x4x8xf32, #tpu.memory_space<vmem>>, %arg4: memref<2x4x1xf32, #tpu.memory_space<vmem>>, %arg5: memref<18x8x4xf32, #tpu.memory_space<vmem>>, %arg6: memref<2x8x1xf32, #tpu.memory_space<vmem>>, %arg7: memref<9x4x128xf32, #tpu.memory_space<vmem>>, %arg8: memref<8x128xf32, #tpu.memory_space<vmem>>) attributes {dimension_semantics = [], scalar_prefetch = 0 : i64, scratch_operands = 0 : i64, tpu.core_type = #tpu.core_type<tc>} {
    %c0 = arith.constant 0 : index
    %c0_0 = arith.constant 0 : index
    %0 = vector.load %arg1[%c0, %c0_0] : memref<8x36xf32, #tpu.memory_space<vmem>>, vector<8x36xf32>
    %c0_1 = arith.constant 0 : index
    %c0_2 = arith.constant 0 : index
    %1 = vector.load %arg0[%c0_1, %c0_2] : memref<36x128xf32, #tpu.memory_space<vmem>>, vector<36x128xf32>
    %cst = arith.constant dense<0.000000e+00> : vector<8x128xf32>
    %2 = tpu.matmul %0, %1, %cst {dimension_numbers = #tpu.dot_dimension_numbers<[1], [0], [0], [1], [0, 0, 1, 1], [], []>} : vector<8x36xf32>, vector<36x128xf32>, vector<8x128xf32> -> vector<8x128xf32>
    %c0_3 = arith.constant 0 : index
    %c0_4 = arith.constant 0 : index
    %3 = vector.load %arg2[%c0_3, %c0_4] : memref<8x1xf32, #tpu.memory_space<vmem>>, vector<8x1xf32>
    %4 = vector.broadcast %3 : vector<8x1xf32> to vector<8x128xf32>
    %5 = arith.addf %2, %4 : vector<8x128xf32>
    %cst_5 = arith.constant 0.000000e+00 : f32
    %6 = vector.broadcast %cst_5 : f32 to vector<8x128xf32>
    %7 = arith.cmpf oge, %5, %6 : vector<8x128xf32>
    %cst_6 = arith.constant 1.000000e-01 : f32
    %8 = vector.broadcast %cst_6 : f32 to vector<8x128xf32>
    %9 = arith.mulf %8, %5 : vector<8x128xf32>
    %10 = arith.select %7, %5, %9 : vector<8x128xi1>, vector<8x128xf32>
    %c0_7 = arith.constant 0 : index
    %c0_8 = arith.constant 0 : index
    %c0_9 = arith.constant 0 : index
    %11 = vector.load %arg3[%c0_7, %c0_8, %c0_9] : memref<2x4x8xf32, #tpu.memory_space<vmem>>, vector<1x4x8xf32>
    %12 = vector.shape_cast %11 : vector<1x4x8xf32> to vector<4x8xf32>
    %cst_10 = arith.constant dense<0.000000e+00> : vector<4x128xf32>
    %13 = tpu.matmul %12, %10, %cst_10 {dimension_numbers = #tpu.dot_dimension_numbers<[1], [0], [0], [1], [0, 0, 1, 1], [], []>} : vector<4x8xf32>, vector<8x128xf32>, vector<4x128xf32> -> vector<4x128xf32>
    %c0_11 = arith.constant 0 : index
    %c0_12 = arith.constant 0 : index
    %c0_13 = arith.constant 0 : index
    %14 = vector.load %arg4[%c0_11, %c0_12, %c0_13] : memref<2x4x1xf32, #tpu.memory_space<vmem>>, vector<1x4x1xf32>
    %15 = vector.shape_cast %14 : vector<1x4x1xf32> to vector<4x1xf32>
    %16 = vector.broadcast %15 : vector<4x1xf32> to vector<4x128xf32>
    %17 = arith.addf %13, %16 : vector<4x128xf32>
    %cst_14 = arith.constant 0.000000e+00 : f32
    %18 = vector.broadcast %cst_14 : f32 to vector<4x128xf32>
    %19 = arith.cmpf oge, %17, %18 : vector<4x128xf32>
    %cst_15 = arith.constant 1.000000e-01 : f32
    %20 = vector.broadcast %cst_15 : f32 to vector<4x128xf32>
    %21 = arith.mulf %20, %17 : vector<4x128xf32>
    %22 = arith.select %19, %17, %21 : vector<4x128xi1>, vector<4x128xf32>
    %cst_16 = arith.constant 0.000000e+00 : f32
    %23 = vector.broadcast %cst_16 : f32 to vector<8x128xf32>
    %c9_i32 = arith.constant 9 : i32
    %24 = tpu.dynamic_rotate %22 by %c9_i32 dim 1 : vector<4x128xf32>, i32 -> vector<4x128xf32>
    %c0_17 = arith.constant 0 : index
    %c0_18 = arith.constant 0 : index
    %c0_19 = arith.constant 0 : index
    %25 = vector.load %arg7[%c0_17, %c0_18, %c0_19] : memref<9x4x128xf32, #tpu.memory_space<vmem>>, vector<1x4x128xf32>
    %26 = vector.shape_cast %25 : vector<1x4x128xf32> to vector<4x128xf32>
    %27 = arith.mulf %24, %26 : vector<4x128xf32>
    %c0_20 = arith.constant 0 : index
    %c0_21 = arith.constant 0 : index
    %c0_22 = arith.constant 0 : index
    %28 = vector.load %arg5[%c0_20, %c0_21, %c0_22] : memref<18x8x4xf32, #tpu.memory_space<vmem>>, vector<1x8x4xf32>
    %29 = vector.shape_cast %28 : vector<1x8x4xf32> to vector<8x4xf32>
    %cst_23 = arith.constant dense<0.000000e+00> : vector<8x128xf32>
    %30 = tpu.matmul %29, %27, %cst_23 {dimension_numbers = #tpu.dot_dimension_numbers<[1], [0], [0], [1], [0, 0, 1, 1], [], []>} : vector<8x4xf32>, vector<4x128xf32>, vector<8x128xf32> -> vector<8x128xf32>
    %31 = arith.addf %23, %30 : vector<8x128xf32>
    %c8_i32 = arith.constant 8 : i32
    %32 = tpu.dynamic_rotate %22 by %c8_i32 dim 1 : vector<4x128xf32>, i32 -> vector<4x128xf32>
    %c1 = arith.constant 1 : index
    %c0_24 = arith.constant 0 : index
    %c0_25 = arith.constant 0 : index
    %33 = vector.load %arg7[%c1, %c0_24, %c0_25] : memref<9x4x128xf32, #tpu.memory_space<vmem>>, vector<1x4x128xf32>
    %34 = vector.shape_cast %33 : vector<1x4x128xf32> to vector<4x128xf32>
    %35 = arith.mulf %32, %34 : vector<4x128xf32>
    %c1_26 = arith.constant 1 : index
    %c0_27 = arith.constant 0 : index
    %c0_28 = arith.constant 0 : index
    %36 = vector.load %arg5[%c1_26, %c0_27, %c0_28] : memref<18x8x4xf32, #tpu.memory_space<vmem>>, vector<1x8x4xf32>
    %37 = vector.shape_cast %36 : vector<1x8x4xf32> to vector<8x4xf32>
    %cst_29 = arith.constant dense<0.000000e+00> : vector<8x128xf32>
    %38 = tpu.matmul %37, %35, %cst_29 {dimension_numbers = #tpu.dot_dimension_numbers<[1], [0], [0], [1], [0, 0, 1, 1], [], []>} : vector<8x4xf32>, vector<4x128xf32>, vector<8x128xf32> -> vector<8x128xf32>
    %39 = arith.addf %31, %38 : vector<8x128xf32>
    %c7_i32 = arith.constant 7 : i32
    %40 = tpu.dynamic_rotate %22 by %c7_i32 dim 1 : vector<4x128xf32>, i32 -> vector<4x128xf32>
    %c2 = arith.constant 2 : index
    %c0_30 = arith.constant 0 : index
    %c0_31 = arith.constant 0 : index
    %41 = vector.load %arg7[%c2, %c0_30, %c0_31] : memref<9x4x128xf32, #tpu.memory_space<vmem>>, vector<1x4x128xf32>
    %42 = vector.shape_cast %41 : vector<1x4x128xf32> to vector<4x128xf32>
    %43 = arith.mulf %40, %42 : vector<4x128xf32>
    %c2_32 = arith.constant 2 : index
    %c0_33 = arith.constant 0 : index
    %c0_34 = arith.constant 0 : index
    %44 = vector.load %arg5[%c2_32, %c0_33, %c0_34] : memref<18x8x4xf32, #tpu.memory_space<vmem>>, vector<1x8x4xf32>
    %45 = vector.shape_cast %44 : vector<1x8x4xf32> to vector<8x4xf32>
    %cst_35 = arith.constant dense<0.000000e+00> : vector<8x128xf32>
    %46 = tpu.matmul %45, %43, %cst_35 {dimension_numbers = #tpu.dot_dimension_numbers<[1], [0], [0], [1], [0, 0, 1, 1], [], []>} : vector<8x4xf32>, vector<4x128xf32>, vector<8x128xf32> -> vector<8x128xf32>
    %47 = arith.addf %39, %46 : vector<8x128xf32>
    %c1_i32 = arith.constant 1 : i32
    %48 = tpu.dynamic_rotate %22 by %c1_i32 dim 1 : vector<4x128xf32>, i32 -> vector<4x128xf32>
    %c3 = arith.constant 3 : index
    %c0_36 = arith.constant 0 : index
    %c0_37 = arith.constant 0 : index
    %49 = vector.load %arg7[%c3, %c0_36, %c0_37] : memref<9x4x128xf32, #tpu.memory_space<vmem>>, vector<1x4x128xf32>
    %50 = vector.shape_cast %49 : vector<1x4x128xf32> to vector<4x128xf32>
    %51 = arith.mulf %48, %50 : vector<4x128xf32>
    %c3_38 = arith.constant 3 : index
    %c0_39 = arith.constant 0 : index
    %c0_40 = arith.constant 0 : index
    %52 = vector.load %arg5[%c3_38, %c0_39, %c0_40] : memref<18x8x4xf32, #tpu.memory_space<vmem>>, vector<1x8x4xf32>
    %53 = vector.shape_cast %52 : vector<1x8x4xf32> to vector<8x4xf32>
    %cst_41 = arith.constant dense<0.000000e+00> : vector<8x128xf32>
    %54 = tpu.matmul %53, %51, %cst_41 {dimension_numbers = #tpu.dot_dimension_numbers<[1], [0], [0], [1], [0, 0, 1, 1], [], []>} : vector<8x4xf32>, vector<4x128xf32>, vector<8x128xf32> -> vector<8x128xf32>
    %55 = arith.addf %47, %54 : vector<8x128xf32>
    %c4 = arith.constant 4 : index
    %c0_42 = arith.constant 0 : index
    %c0_43 = arith.constant 0 : index
    %56 = vector.load %arg7[%c4, %c0_42, %c0_43] : memref<9x4x128xf32, #tpu.memory_space<vmem>>, vector<1x4x128xf32>
    %57 = vector.shape_cast %56 : vector<1x4x128xf32> to vector<4x128xf32>
    %58 = arith.mulf %22, %57 : vector<4x128xf32>
    %c4_44 = arith.constant 4 : index
    %c0_45 = arith.constant 0 : index
    %c0_46 = arith.constant 0 : index
    %59 = vector.load %arg5[%c4_44, %c0_45, %c0_46] : memref<18x8x4xf32, #tpu.memory_space<vmem>>, vector<1x8x4xf32>
    %60 = vector.shape_cast %59 : vector<1x8x4xf32> to vector<8x4xf32>
    %cst_47 = arith.constant dense<0.000000e+00> : vector<8x128xf32>
    %61 = tpu.matmul %60, %58, %cst_47 {dimension_numbers = #tpu.dot_dimension_numbers<[1], [0], [0], [1], [0, 0, 1, 1], [], []>} : vector<8x4xf32>, vector<4x128xf32>, vector<8x128xf32> -> vector<8x128xf32>
    %62 = arith.addf %55, %61 : vector<8x128xf32>
    %c127_i32 = arith.constant 127 : i32
    %63 = tpu.dynamic_rotate %22 by %c127_i32 dim 1 : vector<4x128xf32>, i32 -> vector<4x128xf32>
    %c5 = arith.constant 5 : index
    %c0_48 = arith.constant 0 : index
    %c0_49 = arith.constant 0 : index
    %64 = vector.load %arg7[%c5, %c0_48, %c0_49] : memref<9x4x128xf32, #tpu.memory_space<vmem>>, vector<1x4x128xf32>
    %65 = vector.shape_cast %64 : vector<1x4x128xf32> to vector<4x128xf32>
    %66 = arith.mulf %63, %65 : vector<4x128xf32>
    %c5_50 = arith.constant 5 : index
    %c0_51 = arith.constant 0 : index
    %c0_52 = arith.constant 0 : index
    %67 = vector.load %arg5[%c5_50, %c0_51, %c0_52] : memref<18x8x4xf32, #tpu.memory_space<vmem>>, vector<1x8x4xf32>
    %68 = vector.shape_cast %67 : vector<1x8x4xf32> to vector<8x4xf32>
    %cst_53 = arith.constant dense<0.000000e+00> : vector<8x128xf32>
    %69 = tpu.matmul %68, %66, %cst_53 {dimension_numbers = #tpu.dot_dimension_numbers<[1], [0], [0], [1], [0, 0, 1, 1], [], []>} : vector<8x4xf32>, vector<4x128xf32>, vector<8x128xf32> -> vector<8x128xf32>
    %70 = arith.addf %62, %69 : vector<8x128xf32>
    %c121_i32 = arith.constant 121 : i32
    %71 = tpu.dynamic_rotate %22 by %c121_i32 dim 1 : vector<4x128xf32>, i32 -> vector<4x128xf32>
    %c6 = arith.constant 6 : index
    %c0_54 = arith.constant 0 : index
    %c0_55 = arith.constant 0 : index
    %72 = vector.load %arg7[%c6, %c0_54, %c0_55] : memref<9x4x128xf32, #tpu.memory_space<vmem>>, vector<1x4x128xf32>
    %73 = vector.shape_cast %72 : vector<1x4x128xf32> to vector<4x128xf32>
    %74 = arith.mulf %71, %73 : vector<4x128xf32>
    %c6_56 = arith.constant 6 : index
    %c0_57 = arith.constant 0 : index
    %c0_58 = arith.constant 0 : index
    %75 = vector.load %arg5[%c6_56, %c0_57, %c0_58] : memref<18x8x4xf32, #tpu.memory_space<vmem>>, vector<1x8x4xf32>
    %76 = vector.shape_cast %75 : vector<1x8x4xf32> to vector<8x4xf32>
    %cst_59 = arith.constant dense<0.000000e+00> : vector<8x128xf32>
    %77 = tpu.matmul %76, %74, %cst_59 {dimension_numbers = #tpu.dot_dimension_numbers<[1], [0], [0], [1], [0, 0, 1, 1], [], []>} : vector<8x4xf32>, vector<4x128xf32>, vector<8x128xf32> -> vector<8x128xf32>
    %78 = arith.addf %70, %77 : vector<8x128xf32>
    %c120_i32 = arith.constant 120 : i32
    %79 = tpu.dynamic_rotate %22 by %c120_i32 dim 1 : vector<4x128xf32>, i32 -> vector<4x128xf32>
    %c7 = arith.constant 7 : index
    %c0_60 = arith.constant 0 : index
    %c0_61 = arith.constant 0 : index
    %80 = vector.load %arg7[%c7, %c0_60, %c0_61] : memref<9x4x128xf32, #tpu.memory_space<vmem>>, vector<1x4x128xf32>
    %81 = vector.shape_cast %80 : vector<1x4x128xf32> to vector<4x128xf32>
    %82 = arith.mulf %79, %81 : vector<4x128xf32>
    %c7_62 = arith.constant 7 : index
    %c0_63 = arith.constant 0 : index
    %c0_64 = arith.constant 0 : index
    %83 = vector.load %arg5[%c7_62, %c0_63, %c0_64] : memref<18x8x4xf32, #tpu.memory_space<vmem>>, vector<1x8x4xf32>
    %84 = vector.shape_cast %83 : vector<1x8x4xf32> to vector<8x4xf32>
    %cst_65 = arith.constant dense<0.000000e+00> : vector<8x128xf32>
    %85 = tpu.matmul %84, %82, %cst_65 {dimension_numbers = #tpu.dot_dimension_numbers<[1], [0], [0], [1], [0, 0, 1, 1], [], []>} : vector<8x4xf32>, vector<4x128xf32>, vector<8x128xf32> -> vector<8x128xf32>
    %86 = arith.addf %78, %85 : vector<8x128xf32>
    %c119_i32 = arith.constant 119 : i32
    %87 = tpu.dynamic_rotate %22 by %c119_i32 dim 1 : vector<4x128xf32>, i32 -> vector<4x128xf32>
    %c8 = arith.constant 8 : index
    %c0_66 = arith.constant 0 : index
    %c0_67 = arith.constant 0 : index
    %88 = vector.load %arg7[%c8, %c0_66, %c0_67] : memref<9x4x128xf32, #tpu.memory_space<vmem>>, vector<1x4x128xf32>
    %89 = vector.shape_cast %88 : vector<1x4x128xf32> to vector<4x128xf32>
    %90 = arith.mulf %87, %89 : vector<4x128xf32>
    %c8_68 = arith.constant 8 : index
    %c0_69 = arith.constant 0 : index
    %c0_70 = arith.constant 0 : index
    %91 = vector.load %arg5[%c8_68, %c0_69, %c0_70] : memref<18x8x4xf32, #tpu.memory_space<vmem>>, vector<1x8x4xf32>
    %92 = vector.shape_cast %91 : vector<1x8x4xf32> to vector<8x4xf32>
    %cst_71 = arith.constant dense<0.000000e+00> : vector<8x128xf32>
    %93 = tpu.matmul %92, %90, %cst_71 {dimension_numbers = #tpu.dot_dimension_numbers<[1], [0], [0], [1], [0, 0, 1, 1], [], []>} : vector<8x4xf32>, vector<4x128xf32>, vector<8x128xf32> -> vector<8x128xf32>
    %94 = arith.addf %86, %93 : vector<8x128xf32>
    %c0_72 = arith.constant 0 : index
    %c0_73 = arith.constant 0 : index
    %c0_74 = arith.constant 0 : index
    %95 = vector.load %arg6[%c0_72, %c0_73, %c0_74] : memref<2x8x1xf32, #tpu.memory_space<vmem>>, vector<1x8x1xf32>
    %96 = vector.shape_cast %95 : vector<1x8x1xf32> to vector<8x1xf32>
    %97 = vector.broadcast %96 : vector<8x1xf32> to vector<8x128xf32>
    %98 = arith.addf %94, %97 : vector<8x128xf32>
    %cst_75 = arith.constant 0.000000e+00 : f32
    %99 = vector.broadcast %cst_75 : f32 to vector<8x128xf32>
    %100 = arith.cmpf oge, %98, %99 : vector<8x128xf32>
    %cst_76 = arith.constant 1.000000e-01 : f32
    %101 = vector.broadcast %cst_76 : f32 to vector<8x128xf32>
    %102 = arith.mulf %101, %98 : vector<8x128xf32>
    %103 = arith.select %100, %98, %102 : vector<8x128xi1>, vector<8x128xf32>
    %104 = arith.addf %10, %103 : vector<8x128xf32>
    %c1_77 = arith.constant 1 : index
    %c0_78 = arith.constant 0 : index
    %c0_79 = arith.constant 0 : index
    %105 = vector.load %arg3[%c1_77, %c0_78, %c0_79] : memref<2x4x8xf32, #tpu.memory_space<vmem>>, vector<1x4x8xf32>
    %106 = vector.shape_cast %105 : vector<1x4x8xf32> to vector<4x8xf32>
    %cst_80 = arith.constant dense<0.000000e+00> : vector<4x128xf32>
    %107 = tpu.matmul %106, %104, %cst_80 {dimension_numbers = #tpu.dot_dimension_numbers<[1], [0], [0], [1], [0, 0, 1, 1], [], []>} : vector<4x8xf32>, vector<8x128xf32>, vector<4x128xf32> -> vector<4x128xf32>
    %c1_81 = arith.constant 1 : index
    %c0_82 = arith.constant 0 : index
    %c0_83 = arith.constant 0 : index
    %108 = vector.load %arg4[%c1_81, %c0_82, %c0_83] : memref<2x4x1xf32, #tpu.memory_space<vmem>>, vector<1x4x1xf32>
    %109 = vector.shape_cast %108 : vector<1x4x1xf32> to vector<4x1xf32>
    %110 = vector.broadcast %109 : vector<4x1xf32> to vector<4x128xf32>
    %111 = arith.addf %107, %110 : vector<4x128xf32>
    %cst_84 = arith.constant 0.000000e+00 : f32
    %112 = vector.broadcast %cst_84 : f32 to vector<4x128xf32>
    %113 = arith.cmpf oge, %111, %112 : vector<4x128xf32>
    %cst_85 = arith.constant 1.000000e-01 : f32
    %114 = vector.broadcast %cst_85 : f32 to vector<4x128xf32>
    %115 = arith.mulf %114, %111 : vector<4x128xf32>
    %116 = arith.select %113, %111, %115 : vector<4x128xi1>, vector<4x128xf32>
    %cst_86 = arith.constant 0.000000e+00 : f32
    %117 = vector.broadcast %cst_86 : f32 to vector<8x128xf32>
    %c9_i32_87 = arith.constant 9 : i32
    %118 = tpu.dynamic_rotate %116 by %c9_i32_87 dim 1 : vector<4x128xf32>, i32 -> vector<4x128xf32>
    %c0_88 = arith.constant 0 : index
    %c0_89 = arith.constant 0 : index
    %c0_90 = arith.constant 0 : index
    %119 = vector.load %arg7[%c0_88, %c0_89, %c0_90] : memref<9x4x128xf32, #tpu.memory_space<vmem>>, vector<1x4x128xf32>
    %120 = vector.shape_cast %119 : vector<1x4x128xf32> to vector<4x128xf32>
    %121 = arith.mulf %118, %120 : vector<4x128xf32>
    %c9 = arith.constant 9 : index
    %c0_91 = arith.constant 0 : index
    %c0_92 = arith.constant 0 : index
    %122 = vector.load %arg5[%c9, %c0_91, %c0_92] : memref<18x8x4xf32, #tpu.memory_space<vmem>>, vector<1x8x4xf32>
    %123 = vector.shape_cast %122 : vector<1x8x4xf32> to vector<8x4xf32>
    %cst_93 = arith.constant dense<0.000000e+00> : vector<8x128xf32>
    %124 = tpu.matmul %123, %121, %cst_93 {dimension_numbers = #tpu.dot_dimension_numbers<[1], [0], [0], [1], [0, 0, 1, 1], [], []>} : vector<8x4xf32>, vector<4x128xf32>, vector<8x128xf32> -> vector<8x128xf32>
    %125 = arith.addf %117, %124 : vector<8x128xf32>
    %c8_i32_94 = arith.constant 8 : i32
    %126 = tpu.dynamic_rotate %116 by %c8_i32_94 dim 1 : vector<4x128xf32>, i32 -> vector<4x128xf32>
    %c1_95 = arith.constant 1 : index
    %c0_96 = arith.constant 0 : index
    %c0_97 = arith.constant 0 : index
    %127 = vector.load %arg7[%c1_95, %c0_96, %c0_97] : memref<9x4x128xf32, #tpu.memory_space<vmem>>, vector<1x4x128xf32>
    %128 = vector.shape_cast %127 : vector<1x4x128xf32> to vector<4x128xf32>
    %129 = arith.mulf %126, %128 : vector<4x128xf32>
    %c10 = arith.constant 10 : index
    %c0_98 = arith.constant 0 : index
    %c0_99 = arith.constant 0 : index
    %130 = vector.load %arg5[%c10, %c0_98, %c0_99] : memref<18x8x4xf32, #tpu.memory_space<vmem>>, vector<1x8x4xf32>
    %131 = vector.shape_cast %130 : vector<1x8x4xf32> to vector<8x4xf32>
    %cst_100 = arith.constant dense<0.000000e+00> : vector<8x128xf32>
    %132 = tpu.matmul %131, %129, %cst_100 {dimension_numbers = #tpu.dot_dimension_numbers<[1], [0], [0], [1], [0, 0, 1, 1], [], []>} : vector<8x4xf32>, vector<4x128xf32>, vector<8x128xf32> -> vector<8x128xf32>
    %133 = arith.addf %125, %132 : vector<8x128xf32>
    %c7_i32_101 = arith.constant 7 : i32
    %134 = tpu.dynamic_rotate %116 by %c7_i32_101 dim 1 : vector<4x128xf32>, i32 -> vector<4x128xf32>
    %c2_102 = arith.constant 2 : index
    %c0_103 = arith.constant 0 : index
    %c0_104 = arith.constant 0 : index
    %135 = vector.load %arg7[%c2_102, %c0_103, %c0_104] : memref<9x4x128xf32, #tpu.memory_space<vmem>>, vector<1x4x128xf32>
    %136 = vector.shape_cast %135 : vector<1x4x128xf32> to vector<4x128xf32>
    %137 = arith.mulf %134, %136 : vector<4x128xf32>
    %c11 = arith.constant 11 : index
    %c0_105 = arith.constant 0 : index
    %c0_106 = arith.constant 0 : index
    %138 = vector.load %arg5[%c11, %c0_105, %c0_106] : memref<18x8x4xf32, #tpu.memory_space<vmem>>, vector<1x8x4xf32>
    %139 = vector.shape_cast %138 : vector<1x8x4xf32> to vector<8x4xf32>
    %cst_107 = arith.constant dense<0.000000e+00> : vector<8x128xf32>
    %140 = tpu.matmul %139, %137, %cst_107 {dimension_numbers = #tpu.dot_dimension_numbers<[1], [0], [0], [1], [0, 0, 1, 1], [], []>} : vector<8x4xf32>, vector<4x128xf32>, vector<8x128xf32> -> vector<8x128xf32>
    %141 = arith.addf %133, %140 : vector<8x128xf32>
    %c1_i32_108 = arith.constant 1 : i32
    %142 = tpu.dynamic_rotate %116 by %c1_i32_108 dim 1 : vector<4x128xf32>, i32 -> vector<4x128xf32>
    %c3_109 = arith.constant 3 : index
    %c0_110 = arith.constant 0 : index
    %c0_111 = arith.constant 0 : index
    %143 = vector.load %arg7[%c3_109, %c0_110, %c0_111] : memref<9x4x128xf32, #tpu.memory_space<vmem>>, vector<1x4x128xf32>
    %144 = vector.shape_cast %143 : vector<1x4x128xf32> to vector<4x128xf32>
    %145 = arith.mulf %142, %144 : vector<4x128xf32>
    %c12 = arith.constant 12 : index
    %c0_112 = arith.constant 0 : index
    %c0_113 = arith.constant 0 : index
    %146 = vector.load %arg5[%c12, %c0_112, %c0_113] : memref<18x8x4xf32, #tpu.memory_space<vmem>>, vector<1x8x4xf32>
    %147 = vector.shape_cast %146 : vector<1x8x4xf32> to vector<8x4xf32>
    %cst_114 = arith.constant dense<0.000000e+00> : vector<8x128xf32>
    %148 = tpu.matmul %147, %145, %cst_114 {dimension_numbers = #tpu.dot_dimension_numbers<[1], [0], [0], [1], [0, 0, 1, 1], [], []>} : vector<8x4xf32>, vector<4x128xf32>, vector<8x128xf32> -> vector<8x128xf32>
    %149 = arith.addf %141, %148 : vector<8x128xf32>
    %c4_115 = arith.constant 4 : index
    %c0_116 = arith.constant 0 : index
    %c0_117 = arith.constant 0 : index
    %150 = vector.load %arg7[%c4_115, %c0_116, %c0_117] : memref<9x4x128xf32, #tpu.memory_space<vmem>>, vector<1x4x128xf32>
    %151 = vector.shape_cast %150 : vector<1x4x128xf32> to vector<4x128xf32>
    %152 = arith.mulf %116, %151 : vector<4x128xf32>
    %c13 = arith.constant 13 : index
    %c0_118 = arith.constant 0 : index
    %c0_119 = arith.constant 0 : index
    %153 = vector.load %arg5[%c13, %c0_118, %c0_119] : memref<18x8x4xf32, #tpu.memory_space<vmem>>, vector<1x8x4xf32>
    %154 = vector.shape_cast %153 : vector<1x8x4xf32> to vector<8x4xf32>
    %cst_120 = arith.constant dense<0.000000e+00> : vector<8x128xf32>
    %155 = tpu.matmul %154, %152, %cst_120 {dimension_numbers = #tpu.dot_dimension_numbers<[1], [0], [0], [1], [0, 0, 1, 1], [], []>} : vector<8x4xf32>, vector<4x128xf32>, vector<8x128xf32> -> vector<8x128xf32>
    %156 = arith.addf %149, %155 : vector<8x128xf32>
    %c127_i32_121 = arith.constant 127 : i32
    %157 = tpu.dynamic_rotate %116 by %c127_i32_121 dim 1 : vector<4x128xf32>, i32 -> vector<4x128xf32>
    %c5_122 = arith.constant 5 : index
    %c0_123 = arith.constant 0 : index
    %c0_124 = arith.constant 0 : index
    %158 = vector.load %arg7[%c5_122, %c0_123, %c0_124] : memref<9x4x128xf32, #tpu.memory_space<vmem>>, vector<1x4x128xf32>
    %159 = vector.shape_cast %158 : vector<1x4x128xf32> to vector<4x128xf32>
    %160 = arith.mulf %157, %159 : vector<4x128xf32>
    %c14 = arith.constant 14 : index
    %c0_125 = arith.constant 0 : index
    %c0_126 = arith.constant 0 : index
    %161 = vector.load %arg5[%c14, %c0_125, %c0_126] : memref<18x8x4xf32, #tpu.memory_space<vmem>>, vector<1x8x4xf32>
    %162 = vector.shape_cast %161 : vector<1x8x4xf32> to vector<8x4xf32>
    %cst_127 = arith.constant dense<0.000000e+00> : vector<8x128xf32>
    %163 = tpu.matmul %162, %160, %cst_127 {dimension_numbers = #tpu.dot_dimension_numbers<[1], [0], [0], [1], [0, 0, 1, 1], [], []>} : vector<8x4xf32>, vector<4x128xf32>, vector<8x128xf32> -> vector<8x128xf32>
    %164 = arith.addf %156, %163 : vector<8x128xf32>
    %c121_i32_128 = arith.constant 121 : i32
    %165 = tpu.dynamic_rotate %116 by %c121_i32_128 dim 1 : vector<4x128xf32>, i32 -> vector<4x128xf32>
    %c6_129 = arith.constant 6 : index
    %c0_130 = arith.constant 0 : index
    %c0_131 = arith.constant 0 : index
    %166 = vector.load %arg7[%c6_129, %c0_130, %c0_131] : memref<9x4x128xf32, #tpu.memory_space<vmem>>, vector<1x4x128xf32>
    %167 = vector.shape_cast %166 : vector<1x4x128xf32> to vector<4x128xf32>
    %168 = arith.mulf %165, %167 : vector<4x128xf32>
    %c15 = arith.constant 15 : index
    %c0_132 = arith.constant 0 : index
    %c0_133 = arith.constant 0 : index
    %169 = vector.load %arg5[%c15, %c0_132, %c0_133] : memref<18x8x4xf32, #tpu.memory_space<vmem>>, vector<1x8x4xf32>
    %170 = vector.shape_cast %169 : vector<1x8x4xf32> to vector<8x4xf32>
    %cst_134 = arith.constant dense<0.000000e+00> : vector<8x128xf32>
    %171 = tpu.matmul %170, %168, %cst_134 {dimension_numbers = #tpu.dot_dimension_numbers<[1], [0], [0], [1], [0, 0, 1, 1], [], []>} : vector<8x4xf32>, vector<4x128xf32>, vector<8x128xf32> -> vector<8x128xf32>
    %172 = arith.addf %164, %171 : vector<8x128xf32>
    %c120_i32_135 = arith.constant 120 : i32
    %173 = tpu.dynamic_rotate %116 by %c120_i32_135 dim 1 : vector<4x128xf32>, i32 -> vector<4x128xf32>
    %c7_136 = arith.constant 7 : index
    %c0_137 = arith.constant 0 : index
    %c0_138 = arith.constant 0 : index
    %174 = vector.load %arg7[%c7_136, %c0_137, %c0_138] : memref<9x4x128xf32, #tpu.memory_space<vmem>>, vector<1x4x128xf32>
    %175 = vector.shape_cast %174 : vector<1x4x128xf32> to vector<4x128xf32>
    %176 = arith.mulf %173, %175 : vector<4x128xf32>
    %c16 = arith.constant 16 : index
    %c0_139 = arith.constant 0 : index
    %c0_140 = arith.constant 0 : index
    %177 = vector.load %arg5[%c16, %c0_139, %c0_140] : memref<18x8x4xf32, #tpu.memory_space<vmem>>, vector<1x8x4xf32>
    %178 = vector.shape_cast %177 : vector<1x8x4xf32> to vector<8x4xf32>
    %cst_141 = arith.constant dense<0.000000e+00> : vector<8x128xf32>
    %179 = tpu.matmul %178, %176, %cst_141 {dimension_numbers = #tpu.dot_dimension_numbers<[1], [0], [0], [1], [0, 0, 1, 1], [], []>} : vector<8x4xf32>, vector<4x128xf32>, vector<8x128xf32> -> vector<8x128xf32>
    %180 = arith.addf %172, %179 : vector<8x128xf32>
    %c119_i32_142 = arith.constant 119 : i32
    %181 = tpu.dynamic_rotate %116 by %c119_i32_142 dim 1 : vector<4x128xf32>, i32 -> vector<4x128xf32>
    %c8_143 = arith.constant 8 : index
    %c0_144 = arith.constant 0 : index
    %c0_145 = arith.constant 0 : index
    %182 = vector.load %arg7[%c8_143, %c0_144, %c0_145] : memref<9x4x128xf32, #tpu.memory_space<vmem>>, vector<1x4x128xf32>
    %183 = vector.shape_cast %182 : vector<1x4x128xf32> to vector<4x128xf32>
    %184 = arith.mulf %181, %183 : vector<4x128xf32>
    %c17 = arith.constant 17 : index
    %c0_146 = arith.constant 0 : index
    %c0_147 = arith.constant 0 : index
    %185 = vector.load %arg5[%c17, %c0_146, %c0_147] : memref<18x8x4xf32, #tpu.memory_space<vmem>>, vector<1x8x4xf32>
    %186 = vector.shape_cast %185 : vector<1x8x4xf32> to vector<8x4xf32>
    %cst_148 = arith.constant dense<0.000000e+00> : vector<8x128xf32>
    %187 = tpu.matmul %186, %184, %cst_148 {dimension_numbers = #tpu.dot_dimension_numbers<[1], [0], [0], [1], [0, 0, 1, 1], [], []>} : vector<8x4xf32>, vector<4x128xf32>, vector<8x128xf32> -> vector<8x128xf32>
    %188 = arith.addf %180, %187 : vector<8x128xf32>
    %c1_149 = arith.constant 1 : index
    %c0_150 = arith.constant 0 : index
    %c0_151 = arith.constant 0 : index
    %189 = vector.load %arg6[%c1_149, %c0_150, %c0_151] : memref<2x8x1xf32, #tpu.memory_space<vmem>>, vector<1x8x1xf32>
    %190 = vector.shape_cast %189 : vector<1x8x1xf32> to vector<8x1xf32>
    %191 = vector.broadcast %190 : vector<8x1xf32> to vector<8x128xf32>
    %192 = arith.addf %188, %191 : vector<8x128xf32>
    %cst_152 = arith.constant 0.000000e+00 : f32
    %193 = vector.broadcast %cst_152 : f32 to vector<8x128xf32>
    %194 = arith.cmpf oge, %192, %193 : vector<8x128xf32>
    %cst_153 = arith.constant 1.000000e-01 : f32
    %195 = vector.broadcast %cst_153 : f32 to vector<8x128xf32>
    %196 = arith.mulf %195, %192 : vector<8x128xf32>
    %197 = arith.select %194, %192, %196 : vector<8x128xi1>, vector<8x128xf32>
    %198 = arith.addf %104, %197 : vector<8x128xf32>
    %c0_154 = arith.constant 0 : index
    %c0_155 = arith.constant 0 : index
    %199 = vector.load %arg8[%c0_154, %c0_155] : memref<8x128xf32, #tpu.memory_space<vmem>>, vector<8x128xf32>
    tpu.vector_store %arg8[%c0_154, %c0_155], %198 {strides = array<i32>} : memref<8x128xf32, #tpu.memory_space<vmem>>, vector<8x128xf32>,
    return
  }
}

</mosaic_0001>

<bundles_post_ra>
// kernel: residual_operator_forward.1
= control target key start
LH: loop header
LB: loop body
LE: loop exit
PB: predicated region body
PF: predicated region fallthrough
CT: control target
= control target key end

     0   :  { %v2051_v0 = vmov 0.0|0.0   ;;  %vm2052_vm0 = vmmov 0   ;;  %v2053_v4 = vmov 0.0   ;;  %v2054_v7 = vmov 0   ;;  %s2056_s21 = smov 8   ;;  %s2057_s22 = smov 127   ;;  %s2393_s0 = inlined_call_operand.vmem [shape: f32[36,128], index: 0, kind: input, shape index: {}]   ;;  %s2394_s2 = inlined_call_operand.vmem [shape: f32[8,1], index: 2, kind: input, shape index: {}]   ;;  %s2395_s4 = inlined_call_operand.vmem [shape: f32[2,4,1], index: 4, kind: input, shape index: {}]   ;;  %s2396_s1 = inlined_call_operand.vmem [shape: f32[8,36], index: 1, kind: input, shape index: {}]   ;;  %s2397_s3 = inlined_call_operand.vmem [shape: f32[2,4,8], index: 3, kind: input, shape index: {}]   ;;  %s2398_s6 = inlined_call_operand.vmem [shape: f32[2,8,1], index: 6, kind: input, shape index: {}]   ;;  %s2399_s7 = inlined_call_operand.vmem [shape: f32[9,4,128], index: 7, kind: input, shape index: {}]   ;;  %s2400_s5 = inlined_call_operand.vmem [shape: f32[18,8,4], index: 5, kind: input, shape index: {}]   ;;  %s2401_s8 = inlined_call_operand.vmem [shape: f32[8,128], index: 8, kind: output, shape index: {}]  }
   0x1   :  { %2031 = vmatprep.subr.bf16.mxu0 %v2051_v0  ;;  %v30_v1 = vld [vmem:[%s2393_s0] sm:$0xff]  ;;  %v31_v2 = vld [vmem:[%s2393_s0 + $0x8] sm:$0xff]  ;;  %v32_v3 = vld [vmem:[%s2393_s0 + $0x10] sm:$0xff]  ;;  %1928 = vmatprep.mubr.msk.f32.mxu0 %vm2052_vm0, %v2053_v4  ;;  %vm45_vm1 = vcmask 1043456   ;;  %vm41_vm2 = vcmask 293888   ;;  %vm129_vm4 = vcmask 64512  }
   0x2   :  { %v2032_v5 = vpack.c.bf16 %v31_v2, %v30_v1  ;;  %v33_v6 = vld [vmem:[%s2393_s0 + $0x18] sm:$0xff]  ;;  %2049 = vset.pattern.permute.xlu0 %v2054_v7  ;;  %1931 = vmatprep.subr.mxu1 %v2053_v4  ;;  %v35_v8 = vld [vmem:[%s2394_s2] sm:$0xff]  ;;  %s2058_s23 = smov 9   ;;  %s2059_s24 = smov 120   ;;  %v2166_v27 = vld [vmem:[%s2399_s7 + $0x8] sm:$0xf] }
   0x3   :  { %1933 = vmatprep.mubr.msk.f32.mxu1 %vm2052_vm0, %v2053_v4  ;;  %2050 = vset.pattern.permute.xlu1 %v2054_v7  ;;  %v2035_v9 = vpack.c.bf16 %v33_v6, %v32_v3  ;;  %v123_v10 = vld [vmem:[%s2395_s4] sm:$0xf]  ;;  %s2060_s25 = smov 1   ;;  %s2061_s28 = smov 121   ;;  %v2171_v28 = vld [vmem:[%s2399_s7 + $0x4] sm:$0xf] }
   0x4   :  { %2033 = vmatpush3.bf16.msra.mxu0 %v2032_v5  ;;  %38 = vperm.xlu0 %2049, %v35_v8   ;;  %v34_v11 = vld [vmem:[%s2393_s0 + $0x20] sm:$0xf]  ;;  %s2062_s29 = smov 119   ;;  %v1808_v33 = vld [vmem:[%s2400_s5 + $0x8] sm:$0xff]  ;;  %vm218_vm6 = vcmask 31744   ;;  %v1814_v36 = vld [vmem:[%s2400_s5 + $0x10] sm:$0xff] }
   0x5   :  { %2034 = vmatprep.subr.bf16.mxu0 %v2051_v0  ;;  %v29_v12 = vld [vmem:[%s2396_s1] sm:$0xff]  ;;  %s2055_s1 = smov 7   ;;  %v2181_v34 = vld [vmem:[%s2399_s7 + $0x10] sm:$0xf]  ;;  %v2208_v42 = vld [vmem:[%s2399_s7 + $0xc] sm:$0xf] }
   0x6   :  { %v122_v18 = vld [vmem:[%s2397_s3] sm:$0xf]  ;;  %v2219_v44 = vld [vmem:[%s2399_s7 + $0x14] sm:$0xf]  ;;  %v1818_v47 = vld [vmem:[%s2400_s5 + $0x18] sm:$0xff] }
   0x7   :  { %v957_v26 = vld [vmem:[%s2398_s6] sm:$0xff]  ;;  %v2233_v48 = vld [vmem:[%s2399_s7 + $0x18] sm:$0xf]  ;;  %v2243_v50 = vld [vmem:[%s2399_s7 + $0x1c] sm:$0xf] }
   0x8   :  { %2036 = vmatpush3.bf16.msra.mxu0 %v2035_v9  ;;  %126 = vperm.xlu0 %2049, %v123_v10   ;;  %v2186_v35 = vld [vmem:[%s2399_s7] sm:$0xf]  ;;  %v1826_v54 = vld [vmem:[%s2400_s5 + $0x28] sm:$0xff]  ;;  %v1830_v55 = vld [vmem:[%s2400_s5 + $0x30] sm:$0xff] }
   0x9   :  { %1926 = vmatprep.subr.mxu0 %v2053_v4  ;;  %v210_v40 = vld [vmem:[%s2400_s5] sm:$0xff]  ;;  %v1834_v60 = vld [vmem:[%s2400_s5 + $0x38] sm:$0xff] }
   0xa   :  { %v1822_v43 = vld [vmem:[%s2400_s5 + $0x20] sm:$0xff] }
   0xb   :  { %v2261_v56 = vld [vmem:[%s2399_s7 + $0x20] sm:$0xf]  ;;  %v1842_v62 = vld [vmem:[%s2395_s4 + $0x4] sm:$0xf] }
   0xc   :  { %1927 = vmatpush3.msk.msra.mxu0 %vm45_vm1, %v34_v11  ;;  %v1838_v61 = vld [vmem:[%s2400_s5 + $0x40] sm:$0xff] }
   0xd   :  { %1929 = vmatmul.mubr.msk.f32.vlgmr.msra.gmra.mrb[0].mxu0 %vm41_vm2, %v29_v12  ;;  %1946 = vmatprep.subr.mxu0 %v2053_v4 }
   0xe   :  { %1948 = vmatprep.mubr.msk.f32.mxu0 %vm2052_vm0, %v2053_v4 }
  0x83   :  { %v39_v13 = vpop.permute.xlu0 %38 }
  0x87   :  { %v127_v20 = vpop.permute.xlu0 %126 }
  0xe0   :  { %v115_v14 = vpop.f32.mrb[0].mxu0 }
  0xe1   :  { %v116_v15 = vadd.f32 %v115_v14, %v39_v13  ;;  %v1930_v16 = vpop.f32.mrb[1].mxu0 }
  0xe3   :  { %vm119_vm3 = vcmp.ge.f32.partialorder %v116_v15, 0.0  ;;  %v120_v17 = vmul.f32 0.1, %v116_v15 }
  0xe5   :  { %v2145_v19 = vsel %vm119_vm3, %v116_v15, %v120_v17 }
  0xe6   :  { %1932 = vmatpush3.msra.mxu1 %v2145_v19 }
  0xe7   :  { %1934 = vmatmul.mubr.msk.f32.vlgmr.msra.gmra.mrb[0].mxu1 %vm129_vm4, %v122_v18  ;;  %1936 = vmatprep.subr.mxu1 %v2053_v4 }
  0xe8   :  { %1938 = vmatprep.mubr.msk.f32.mxu1 %vm2052_vm0, %v2053_v4 }
 0x1ba   :  { %v199_v21 = vpop.f32.mrb[0].mxu1 }
 0x1bb   :  { %v200_v22 = vadd.f32 %v199_v21, %v127_v20  ;;  %v1935_v23 = vpop.f32.mrb[1].mxu1 }
 0x1bd   :  { %vm203_vm5 = vcmp.ge.f32.partialorder %v200_v22, 0.0  ;;  %v204_v24 = vmul.f32 0.1, %v200_v22 }
 0x1bf   :  { %v205_v25 = vsel %vm203_vm5, %v200_v22, %v204_v24 }
 0x1c0   :  { %371 = vrot.lane.b32.xlu0 %v205_v25, %s2055_s1  ;;  %211 = vrot.lane.b32.xlu1 %v205_v25, %s2056_s21  ;;  %v541_v38 = vmul.f32 %v2181_v34, %v205_v25 }
 0x1c4   :  { %621 = vrot.lane.b32.xlu0 %v205_v25, %s2057_s22  ;;  %206 = vrot.lane.b32.xlu1 %v205_v25, %s2058_s23 }
 0x1c8   :  { %789 = vrot.lane.b32.xlu0 %v205_v25, %s2059_s24  ;;  %455 = vrot.lane.b32.xlu1 %v205_v25, %s2060_s25 }
 0x1cc   :  { %960 = vperm.xlu0 %2049, %v957_v26   ;;  %705 = vrot.lane.b32.xlu1 %v205_v25, %s2061_s28 }
 0x1d0   :  { %873 = vrot.lane.b32.xlu1 %v205_v25, %s2062_s29 }
 0x1d4   :  { %974 = vperm.xlu1 %2050, %v1842_v62  }
 0x232   :  { %v372_v29 = vpop.permute.xlu0 %371  ;;  %v212_v30 = vpop.permute.xlu1 %211 }
 0x233   :  { %v375_v31 = vmul.f32 %v2166_v27, %v372_v29  ;;  %v215_v32 = vmul.f32 %v2171_v28, %v212_v30 }
 0x235   :  { %1937 = vmatpush3.msk.msra.mxu1 %vm45_vm1, %v215_v32  ;;  %1947 = vmatpush3.msk.msra.mxu0 %vm45_vm1, %v375_v31 }
 0x236   :  { %1956 = vmatprep.subr.mxu0 %v2053_v4  ;;  %1939 = vmatmul.mubr.msk.f32.vlgmr.msra.gmra.mrb[2].mxu1 %vm218_vm6, %v1808_v33  ;;  %v207_v37 = vpop.permute.xlu1 %206  ;;  %v622_v41 = vpop.permute.xlu0 %621  ;;  %v1841_v33 = vld [vmem:[%s2397_s3 + $0x4] sm:$0xf] }
 0x237   :  { %v209_v39 = vmul.f32 %v2186_v35, %v207_v37  ;;  %1949 = vmatmul.mubr.msk.f32.vlgmr.msra.gmra.mrb[2].mxu0 %vm218_vm6, %v1814_v36  ;;  %1941 = vmatprep.subr.mxu1 %v2053_v4  ;;  %v625_v49 = vmul.f32 %v2219_v44, %v622_v41 }
 0x238   :  { %1957 = vmatpush3.msk.msra.mxu0 %vm45_vm1, %v541_v38  ;;  %1943 = vmatprep.mubr.msk.f32.mxu1 %vm2052_vm0, %v2053_v4 }
 0x239   :  { %1942 = vmatpush3.msk.msra.mxu1 %vm45_vm1, %v209_v39  ;;  %1958 = vmatprep.mubr.msk.f32.mxu0 %vm2052_vm0, %v2053_v4 }
 0x23a   :  { %1944 = vmatmul.mubr.msk.f32.vlgmr.msra.gmra.mrb[4].mxu1 %vm218_vm6, %v210_v40  ;;  %v456_v45 = vpop.permute.xlu1 %455  ;;  %1951 = vmatprep.subr.mxu1 %v2053_v4  ;;  %v790_v51 = vpop.permute.xlu0 %789 }
 0x23b   :  { %v459_v46 = vmul.f32 %v2208_v42, %v456_v45  ;;  %1953 = vmatprep.mubr.msk.f32.mxu1 %vm2052_vm0, %v2053_v4  ;;  %1959 = vmatmul.mubr.msk.f32.vlgmr.msra.gmra.mrb[4].mxu0 %vm218_vm6, %v1822_v43  ;;  %v793_v57 = vmul.f32 %v2243_v50, %v790_v51  ;;  %v1845_v51 = vld [vmem:[%s2400_s5 + $0x50] sm:$0xff] }
 0x23c   :  { %1966 = vmatprep.subr.mxu0 %v2053_v4  ;;  %1968 = vmatprep.mubr.msk.f32.mxu0 %vm2052_vm0, %v2053_v4 }
 0x23d   :  { %1952 = vmatpush3.msk.msra.mxu1 %vm45_vm1, %v459_v46 }
 0x23e   :  { %1954 = vmatmul.mubr.msk.f32.vlgmr.msra.gmra.mrb[6].mxu1 %vm218_vm6, %v1818_v47  ;;  %1961 = vmatprep.subr.mxu1 %v2053_v4  ;;  %v706_v52 = vpop.permute.xlu1 %705 }
 0x23f   :  { %v709_v53 = vmul.f32 %v2233_v48, %v706_v52  ;;  %1962 = vmatpush3.msk.msra.mxu1 %vm45_vm1, %v625_v49  ;;  %1963 = vmatprep.mubr.msk.f32.mxu1 %vm2052_vm0, %v2053_v4  ;;  %v1844_v52 = vld [vmem:[%s2400_s5 + $0x48] sm:$0xff] }
 0x240   :  { %1971 = vmatprep.subr.mxu1 %v2053_v4 }
 0x241   :  { %1967 = vmatpush3.msk.msra.mxu0 %vm45_vm1, %v709_v53 }
 0x242   :  { %1964 = vmatmul.mubr.msk.f32.vlgmr.msra.gmra.mrb[8].mxu1 %vm218_vm6, %v1826_v54  ;;  %v874_v58 = vpop.permute.xlu1 %873  ;;  %1969 = vmatmul.mubr.msk.f32.vlgmr.msra.gmra.mrb[6].mxu0 %vm218_vm6, %v1830_v55  ;;  %v1850_v55 = vld [vmem:[%s2400_s5 + $0x58] sm:$0xff] }
 0x243   :  { %1972 = vmatpush3.msk.msra.mxu1 %vm45_vm1, %v793_v57  ;;  %v877_v59 = vmul.f32 %v2261_v56, %v874_v58  ;;  %1976 = vmatprep.subr.mxu0 %v2053_v4 }
 0x244   :  { %1973 = vmatprep.mubr.msk.f32.mxu1 %vm2052_vm0, %v2053_v4  ;;  %1978 = vmatprep.mubr.msk.f32.mxu0 %vm2052_vm0, %v2053_v4 }
 0x245   :  { %1977 = vmatpush3.msk.msra.mxu0 %vm45_vm1, %v877_v59  ;;  %1981 = vmatprep.subr.mxu1 %v2053_v4 }
 0x246   :  { %1974 = vmatmul.mubr.msk.f32.vlgmr.msra.gmra.mrb[10].mxu1 %vm218_vm6, %v1834_v60  ;;  %1979 = vmatmul.mubr.msk.f32.vlgmr.msra.gmra.mrb[8].mxu0 %vm218_vm6, %v1838_v61  ;;  %v1856_v61 = vld [vmem:[%s2400_s5 + $0x68] sm:$0xff] }
 0x247   :  { %1983 = vmatprep.mubr.msk.f32.mxu1 %vm2052_vm0, %v2053_v4  ;;  %1986 = vmatprep.subr.mxu0 %v2053_v4 }
 0x248   :  { %1988 = vmatprep.mubr.msk.f32.mxu0 %vm2052_vm0, %v2053_v4 }
 0x24b   :  { %v961_v29 = vpop.permute.xlu0 %960 }
 0x253   :  { %v975_v37 = vpop.permute.xlu1 %974 }
 0x309   :  { %v291_v63 = vpop.f32.mrb[2].mxu1 }
 0x30a   :  { %v1940_v0 = vpop.f32.mrb[3].mxu1  ;;  %v450_v1 = vpop.f32.mrb[2].mxu0 }
 0x30b   :  { %v1950_v2 = vpop.f32.mrb[3].mxu0  ;;  %v1862_v0 = vld [vmem:[%s2400_s5 + $0x78] sm:$0xff] }
 0x30d   :  { %v367_v3 = vpop.f32.mrb[4].mxu1 }
 0x30e   :  { %v368_v5 = vadd.f32 %v367_v3, %v291_v63  ;;  %v1945_v6 = vpop.f32.mrb[5].mxu1  ;;  %v616_v7 = vpop.f32.mrb[4].mxu0 }
 0x30f   :  { %v1960_v8 = vpop.f32.mrb[5].mxu0 }
 0x310   :  { %v454_v9 = vadd.f32 %v450_v1, %v368_v5  ;;  %v1865_v1 = vld [vmem:[%s2400_s5 + $0x80] sm:$0xff] }
 0x311   :  { %v534_v10 = vpop.f32.mrb[6].mxu1 }
 0x312   :  { %v538_v11 = vadd.f32 %v534_v10, %v454_v9  ;;  %v1955_v12 = vpop.f32.mrb[7].mxu1 }
 0x314   :  { %v620_v13 = vadd.f32 %v616_v7, %v538_v11 }
 0x315   :  { %v700_v14 = vpop.f32.mrb[8].mxu1  ;;  %v784_v15 = vpop.f32.mrb[6].mxu0 }
 0x316   :  { %v704_v16 = vadd.f32 %v700_v14, %v620_v13  ;;  %v1965_v17 = vpop.f32.mrb[9].mxu1  ;;  %v1970_v18 = vpop.f32.mrb[7].mxu0 }
 0x318   :  { %v788_v20 = vadd.f32 %v784_v15, %v704_v16 }
 0x319   :  { %v868_v21 = vpop.f32.mrb[10].mxu1  ;;  %v952_v22 = vpop.f32.mrb[8].mxu0 }
 0x31a   :  { %v872_v23 = vadd.f32 %v868_v21, %v788_v20  ;;  %v1975_v24 = vpop.f32.mrb[11].mxu1  ;;  %v1980_v25 = vpop.f32.mrb[9].mxu0 }
 0x31c   :  { %v956_v26 = vadd.f32 %v952_v22, %v872_v23 }
 0x31e   :  { %v963_v30 = vadd.f32 %v961_v29, %v956_v26 }
 0x320   :  { %vm964_vm7 = vcmp.ge.f32.partialorder %v963_v30, 0.0  ;;  %v965_v31 = vmul.f32 0.1, %v963_v30 }
 0x322   :  { %v966_v32 = vsel %vm964_vm7, %v963_v30, %v965_v31 }
 0x323   :  { %v2296_v36 = vadd.f32 %v966_v32, %v2145_v19  ;;  %v1871_v19 = vld [vmem:[%s2398_s6 + $0x8] sm:$0xff] }
 0x325   :  { %1982 = vmatpush3.msra.mxu1 %v2296_v36 }
 0x326   :  { %1984 = vmatmul.mubr.msk.f32.vlgmr.msra.gmra.mrb[12].mxu1 %vm129_vm4, %v1841_v33  ;;  %1991 = vmatprep.subr.mxu1 %v2053_v4 }
 0x327   :  { %1993 = vmatprep.mubr.msk.f32.mxu1 %vm2052_vm0, %v2053_v4 }
 0x3f9   :  { %v1046_v38 = vpop.f32.mrb[12].mxu1 }
 0x3fa   :  { %v1047_v39 = vadd.f32 %v1046_v38, %v975_v37  ;;  %v1985_v40 = vpop.f32.mrb[13].mxu1 }
 0x3fc   :  { %vm1050_vm8 = vcmp.ge.f32.partialorder %v1047_v39, 0.0  ;;  %v1051_v41 = vmul.f32 0.1, %v1047_v39 }
 0x3fe   :  { %v1052_v43 = vsel %vm1050_vm8, %v1047_v39, %v1051_v41 }
 0x3ff   :  { %1053 = vrot.lane.b32.xlu1 %v1052_v43, %s2058_s23  ;;  %1058 = vrot.lane.b32.xlu0 %v1052_v43, %s2056_s21 }
 0x403   :  { %1297 = vrot.lane.b32.xlu1 %v1052_v43, %s2060_s25  ;;  %1215 = vrot.lane.b32.xlu0 %v1052_v43, %s2055_s1 }
 0x407   :  { %1541 = vrot.lane.b32.xlu1 %v1052_v43, %s2061_s28  ;;  %1459 = vrot.lane.b32.xlu0 %v1052_v43, %s2057_s22 }
 0x40b   :  { %1705 = vrot.lane.b32.xlu1 %v1052_v43, %s2062_s29  ;;  %1623 = vrot.lane.b32.xlu0 %v1052_v43, %s2059_s24 }
 0x40f   :  { %1791 = vperm.xlu0 %2049, %v1871_v19  }
 0x471   :  { %v1054_v45 = vpop.permute.xlu1 %1053  ;;  %v1059_v46 = vpop.permute.xlu0 %1058 }
 0x472   :  { %v1055_v47 = vmul.f32 %v1054_v45, %v2186_v35  ;;  %v1060_v49 = vmul.f32 %v2171_v28, %v1059_v46 }
 0x474   :  { %1987 = vmatpush3.msk.msra.mxu0 %vm45_vm1, %v1060_v49  ;;  %1992 = vmatpush3.msk.msra.mxu1 %vm45_vm1, %v1055_v47 }
 0x475   :  { %v1298_v53 = vpop.permute.xlu1 %1297  ;;  %1989 = vmatmul.mubr.msk.f32.vlgmr.msra.gmra.mrb[10].mxu0 %vm218_vm6, %v1845_v51  ;;  %v1216_v54 = vpop.permute.xlu0 %1215  ;;  %1994 = vmatmul.mubr.msk.f32.vlgmr.msra.gmra.mrb[14].mxu1 %vm218_vm6, %v1844_v52 }
 0x476   :  { %v1299_v28 = vmul.f32 %v2208_v42, %v1298_v53  ;;  %v1217_v35 = vmul.f32 %v2166_v27, %v1216_v54  ;;  %1996 = vmatprep.subr.mxu0 %v2053_v4  ;;  %2001 = vmatprep.subr.mxu1 %v2053_v4  ;;  %v1853_v42 = vld [vmem:[%s2400_s5 + $0x60] sm:$0xff]  ;;  %v1379_v27 = vmul.f32 %v2181_v34, %v1052_v43  ;;  %v1859_v34 = vld [vmem:[%s2400_s5 + $0x70] sm:$0xff] }
 0x477   :  { %1998 = vmatprep.mubr.msk.f32.mxu0 %vm2052_vm0, %v2053_v4  ;;  %2003 = vmatprep.mubr.msk.f32.mxu1 %vm2052_vm0, %v2053_v4 }
 0x478   :  { %1997 = vmatpush3.msk.msra.mxu0 %vm45_vm1, %v1217_v35  ;;  %2002 = vmatpush3.msk.msra.mxu1 %vm45_vm1, %v1299_v28 }
 0x479   :  { %v1542_v57 = vpop.permute.xlu1 %1541  ;;  %1999 = vmatmul.mubr.msk.f32.vlgmr.msra.gmra.mrb[12].mxu0 %vm218_vm6, %v1850_v55  ;;  %2006 = vmatprep.subr.mxu0 %v2053_v4  ;;  %v1460_v58 = vpop.permute.xlu0 %1459 }
 0x47a   :  { %v1543_v59 = vmul.f32 %v2233_v48, %v1542_v57  ;;  %v1461_v60 = vmul.f32 %v2219_v44, %v1460_v58  ;;  %2007 = vmatpush3.msk.msra.mxu0 %vm45_vm1, %v1379_v27  ;;  %2004 = vmatmul.mubr.msk.f32.vlgmr.msra.gmra.mrb[16].mxu1 %vm218_vm6, %v1853_v42 }
 0x47b   :  { %2011 = vmatprep.subr.mxu1 %v2053_v4  ;;  %2008 = vmatprep.mubr.msk.f32.mxu0 %vm2052_vm0, %v2053_v4 }
 0x47c   :  { %2012 = vmatpush3.msk.msra.mxu1 %vm45_vm1, %v1461_v60  ;;  %2016 = vmatprep.subr.mxu0 %v2053_v4 }
 0x47d   :  { %v1706_v44 = vpop.permute.xlu1 %1705  ;;  %v1624_v48 = vpop.permute.xlu0 %1623  ;;  %2009 = vmatmul.mubr.msk.f32.vlgmr.msra.gmra.mrb[14].mxu0 %vm218_vm6, %v1856_v61  ;;  %2013 = vmatprep.mubr.msk.f32.mxu1 %vm2052_vm0, %v2053_v4 }
 0x47e   :  { %v1707_v62 = vmul.f32 %v2261_v56, %v1706_v44  ;;  %v1625_v63 = vmul.f32 %v2243_v50, %v1624_v48  ;;  %2017 = vmatpush3.msk.msra.mxu0 %vm45_vm1, %v1543_v59  ;;  %2014 = vmatmul.mubr.msk.f32.vlgmr.msra.gmra.mrb[18].mxu1 %vm218_vm6, %v1859_v34  ;;  %v1868_v50 = vld [vmem:[%s2400_s5 + $0x88] sm:$0xff] }
 0x47f   :  { %2021 = vmatprep.subr.mxu1 %v2053_v4  ;;  %2018 = vmatprep.mubr.msk.f32.mxu0 %vm2052_vm0, %v2053_v4 }
 0x480   :  { %2022 = vmatpush3.msk.msra.mxu1 %vm45_vm1, %v1625_v63  ;;  %2026 = vmatprep.subr.mxu0 %v2053_v4 }
 0x481   :  { %2019 = vmatmul.mubr.msk.f32.vlgmr.msra.gmra.mrb[16].mxu0 %vm218_vm6, %v1862_v0  ;;  %2023 = vmatprep.mubr.msk.f32.mxu1 %vm2052_vm0, %v2053_v4 }
 0x482   :  { %2027 = vmatpush3.msk.msra.mxu0 %vm45_vm1, %v1707_v62  ;;  %2024 = vmatmul.mubr.msk.f32.vlgmr.msra.gmra.mrb[20].mxu1 %vm218_vm6, %v1865_v1 }
 0x483   :  { %2028 = vmatprep.mubr.msk.f32.mxu0 %vm2052_vm0, %v2053_v4 }
 0x485   :  { %2029 = vmatmul.mubr.msk.f32.vlgmr.msra.gmra.mrb[18].mxu0 %vm218_vm6, %v1868_v50 }
 0x48e   :  { %v1792_v30 = vpop.permute.xlu0 %1791 }
 0x548   :  { %v1135_v56 = vpop.f32.mrb[10].mxu0  ;;  %v1211_v2 = vpop.f32.mrb[14].mxu1 }
 0x549   :  { %v1212_v3 = vadd.f32 %v1211_v2, %v1135_v56  ;;  %v1990_v5 = vpop.f32.mrb[11].mxu0  ;;  %v1995_v6 = vpop.f32.mrb[15].mxu1 }
 0x54c   :  { %v1292_v7 = vpop.f32.mrb[12].mxu0 }
 0x54d   :  { %v1296_v8 = vadd.f32 %v1292_v7, %v1212_v3  ;;  %v1374_v9 = vpop.f32.mrb[16].mxu1  ;;  %v2000_v10 = vpop.f32.mrb[13].mxu0 }
 0x54e   :  { %v2005_v11 = vpop.f32.mrb[17].mxu1 }
 0x54f   :  { %v1378_v12 = vadd.f32 %v1374_v9, %v1296_v8 }
 0x550   :  { %v1454_v13 = vpop.f32.mrb[14].mxu0 }
 0x551   :  { %v1458_v14 = vadd.f32 %v1454_v13, %v1378_v12  ;;  %v1536_v15 = vpop.f32.mrb[18].mxu1  ;;  %v2010_v16 = vpop.f32.mrb[15].mxu0 }
 0x552   :  { %v2015_v17 = vpop.f32.mrb[19].mxu1 }
 0x553   :  { %v1540_v18 = vadd.f32 %v1536_v15, %v1458_v14 }
 0x554   :  { %v1618_v4 = vpop.f32.mrb[16].mxu0 }
 0x555   :  { %v1622_v20 = vadd.f32 %v1618_v4, %v1540_v18  ;;  %v1700_v21 = vpop.f32.mrb[20].mxu1  ;;  %v2020_v22 = vpop.f32.mrb[17].mxu0 }
 0x556   :  { %v2025_v23 = vpop.f32.mrb[21].mxu1 }
 0x557   :  { %v1704_v24 = vadd.f32 %v1700_v21, %v1622_v20 }
 0x558   :  { %v1782_v25 = vpop.f32.mrb[18].mxu0 }
 0x559   :  { %v1786_v26 = vadd.f32 %v1782_v25, %v1704_v24  ;;  %v2030_v29 = vpop.f32.mrb[19].mxu0 }
 0x55b   :  { %v1794_v31 = vadd.f32 %v1792_v30, %v1786_v26 }
 0x55d   :  { %vm1795_vm9 = vcmp.ge.f32.partialorder %v1794_v31, 0.0  ;;  %v1796_v32 = vmul.f32 0.1, %v1794_v31 }
 0x55f   :  { %v1797_v33 = vsel %vm1795_vm9, %v1794_v31, %v1796_v32 }
 0x560   :  { %v1798_v37 = vadd.f32 %v1797_v33, %v2296_v36 }
 0x562   :  { %1799 = vst [vmem:[%s2401_s8] sm:$0xff] %v1798_v37 }

</bundles_post_ra>
